<compile_context>
chip_gen: v7x
topology: tpu7x:2x2x1
jax: 0.10.0
libtpu: 0.0.40
codegen_flags: <defaults>
</compile_context>

<pallas_src>
import jax
import jax.numpy as jnp
from jax.experimental import pallas as pl
from jax.experimental.pallas import tpu as pltpu

_LANE = 128
_SUBLANE = 8


def _round_up(x, m):
    return ((x + m - 1) // m) * m


def kt_sigmoid_kernel(su_ref, sq_ref, p0_ref, p1_ref):
    # su_ref, sq_ref : (TR, 128) f32 -- folded per-example scores
    #                  (bias difference already folded into sq).
    # p0_ref, p1_ref : (TR, 128) f32 -- softmax probabilities for class 0 / 1.
    z = su_ref[...] + sq_ref[...]                    # logit difference z1 - z0
    p1 = 1.0 / (1.0 + jnp.exp(-z))                   # exact 2-class softmax
    p1_ref[...] = p1
    p0_ref[...] = 1.0 - p1                           # rows sum to exactly 1


def _pick_tiling(B):
    """Pad B to full (8,128) tiles; pick a row-tile TR that divides the padded
    row count, caps per-step VMEM, and yields >=2 grid steps when there is more
    than one tile of work (feeds both v7x TensorCores)."""
    b_pad = _round_up(max(B, 1), _SUBLANE * _LANE)   # multiple of 1024
    rows = b_pad // _LANE                            # multiple of 8
    if rows <= _SUBLANE:
        tr = rows                                    # single (8,128) tile
    else:
        tr = min(512, max(_SUBLANE, (rows // 2 // _SUBLANE) * _SUBLANE))
        while rows % tr:                             # keep the grid exact
            tr -= _SUBLANE
    return b_pad, rows, tr


def simple_kt_forward(user_ids, question_ids, user_table, question_table, w_t, bias):
    """JAX wrapper reproducing SimpleKTModel.forward.

    user_ids, question_ids : (B,) int32
    user_table             : (num_users, D) f32
    question_table         : (num_questions, D) f32
    w_t                    : (2D, 2) f32   (PyTorch Linear.weight transposed)
    bias                   : (2,) f32
    returns                : (B, 2) f32 softmax probabilities
    """
    D = user_table.shape[1]
    B = user_ids.shape[0]

    # ---- One-time head fold (exact): per-table scalar scores ----------------
    w_diff = (w_t[:, 1] - w_t[:, 0]).astype(jnp.float32)            # (2D,)
    wd_u, wd_q = w_diff[:D], w_diff[D:]
    b_diff = (bias[1] - bias[0]).astype(jnp.float32)
    # f32 elementwise reduce (avoids MXU default-precision loss); O(tables).
    score_u_table = jnp.sum(user_table.astype(jnp.float32) * wd_u[None, :], axis=-1)
    score_q_table = (jnp.sum(question_table.astype(jnp.float32) * wd_q[None, :],
                             axis=-1) + b_diff)

    # ---- Per-example scalar gather (B x 4 bytes per table, left to XLA) -----
    su = jnp.take(score_u_table, user_ids, axis=0)                   # (B,)
    sq = jnp.take(score_q_table, question_ids, axis=0)               # (B,)

    # ---- Lane-dense batch tiling (pad the scalar scores, not (B, D) slabs) --
    b_pad, rows, tr = _pick_tiling(B)
    if b_pad != B:
        su = jnp.pad(su, (0, b_pad - B))
        sq = jnp.pad(sq, (0, b_pad - B))
    su2 = su.reshape(rows, _LANE)
    sq2 = sq.reshape(rows, _LANE)

    spec = pl.BlockSpec((tr, _LANE), lambda i: (i, 0))
    p0, p1 = pl.pallas_call(
        kt_sigmoid_kernel,
        out_shape=(jax.ShapeDtypeStruct((rows, _LANE), jnp.float32),
                   jax.ShapeDtypeStruct((rows, _LANE), jnp.float32)),
        grid_spec=pltpu.PrefetchScalarGridSpec(
            num_scalar_prefetch=0,
            grid=(rows // tr,),
            in_specs=[spec, spec],
            out_specs=[spec, spec],
        ),
        compiler_params=pltpu.CompilerParams(
            dimension_semantics=("parallel",)),
    )(su2, sq2)

    # Final (B, 2) interleave: one tiny XLA stack on the already-small output.
    out = jnp.stack([p0.reshape(-1), p1.reshape(-1)], axis=-1)
    return out[:B]


if __name__ == "__main__":
    # Small, deterministic setup consistent with the module's __init__.
    num_users, num_questions, embedding_dim = 16, 32, 64
    batch = 8

    key = jax.random.PRNGKey(0)
    k_u, k_q, k_w, k_b, k_uid, k_qid = jax.random.split(key, 6)

    # Deterministic parameter init (mimics nn.Embedding ~ N(0,1),
    # nn.Linear ~ U(-1/sqrt(fan_in), 1/sqrt(fan_in))).
    user_table = jax.random.normal(k_u, (num_users, embedding_dim), jnp.float32)
    question_table = jax.random.normal(k_q, (num_questions, embedding_dim), jnp.float32)
    fan_in = 2 * embedding_dim
    bound = float(1.0 / (fan_in ** 0.5))
    # PyTorch Linear.weight is (out=2, in=2D); we store the transposed (2D, 2).
    w_t = jax.random.uniform(k_w, (fan_in, 2), jnp.float32, -bound, bound)
    bias = jax.random.uniform(k_b, (2,), jnp.float32, -bound, bound)

    user_ids = jax.random.randint(k_uid, (batch,), 0, num_users, dtype=jnp.int32)
    question_ids = jax.random.randint(k_qid, (batch,), 0, num_questions, dtype=jnp.int32)

    fwd = jax.jit(simple_kt_forward)
    out = fwd(user_ids, question_ids, user_table, question_table, w_t, bias)
    out = jax.block_until_ready(out)

    # Pure-JAX f32 reference of the same forward pass.
    combined_ref = jnp.concatenate(
        [user_table[user_ids], question_table[question_ids]], axis=-1)
    logits = jnp.dot(combined_ref, w_t, precision=jax.lax.Precision.HIGHEST) + bias
    ref = jax.nn.softmax(logits, axis=-1)

    assert out.shape == (batch, 2)
    assert jnp.allclose(jnp.sum(out, axis=-1), 1.0, atol=1e-6)
    assert jnp.allclose(out, ref, atol=1e-4, rtol=0)

    print("KERNEL_OK")
</pallas_src>

<mosaic_0001>
module attributes {stable_mosaic.version = 11 : i64} {
  func.func @kt_sigmoid_kernel(%arg0: i32, %arg1: memref<8x128xf32, #tpu.memory_space<vmem>>, %arg2: memref<8x128xf32, #tpu.memory_space<vmem>>, %arg3: memref<8x128xf32, #tpu.memory_space<vmem>>, %arg4: memref<8x128xf32, #tpu.memory_space<vmem>>) attributes {dimension_semantics = [#tpu.dimension_semantics<parallel>], iteration_bounds = array<i64: 1>, scalar_prefetch = 0 : i64, scratch_operands = 0 : i64, tpu.core_type = #tpu.core_type<tc>, window_params = [{transform_indices = @transform_0, window_bounds = array<i64: 8, 128>}, {transform_indices = @transform_1, window_bounds = array<i64: 8, 128>}, {transform_indices = @transform_2, window_bounds = array<i64: 8, 128>}, {transform_indices = @transform_3, window_bounds = array<i64: 8, 128>}]} {
    %c0 = arith.constant 0 : index
    %c0_0 = arith.constant 0 : index
    %0 = vector.load %arg1[%c0, %c0_0] : memref<8x128xf32, #tpu.memory_space<vmem>>, vector<8x128xf32>
    %c0_1 = arith.constant 0 : index
    %c0_2 = arith.constant 0 : index
    %1 = vector.load %arg2[%c0_1, %c0_2] : memref<8x128xf32, #tpu.memory_space<vmem>>, vector<8x128xf32>
    %2 = arith.addf %0, %1 : vector<8x128xf32>
    %cst = arith.constant 0.000000e+00 : f32
    %3 = vector.broadcast %cst : f32 to vector<8x128xf32>
    %4 = arith.subf %3, %2 : vector<8x128xf32>
    %5 = math.exp %4 : vector<8x128xf32>
    %cst_3 = arith.constant 1.000000e+00 : f32
    %6 = vector.broadcast %cst_3 : f32 to vector<8x128xf32>
    %7 = arith.addf %6, %5 : vector<8x128xf32>
    %cst_4 = arith.constant 1.000000e+00 : f32
    %8 = vector.broadcast %cst_4 : f32 to vector<8x128xf32>
    %9 = arith.divf %8, %7 : vector<8x128xf32>
    %c0_5 = arith.constant 0 : index
    %c0_6 = arith.constant 0 : index
    %10 = vector.load %arg4[%c0_5, %c0_6] : memref<8x128xf32, #tpu.memory_space<vmem>>, vector<8x128xf32>
    tpu.vector_store %arg4[%c0_5, %c0_6], %9 {strides = array<i32>} : memref<8x128xf32, #tpu.memory_space<vmem>>, vector<8x128xf32>,
    %cst_7 = arith.constant 1.000000e+00 : f32
    %11 = vector.broadcast %cst_7 : f32 to vector<8x128xf32>
    %12 = arith.subf %11, %9 : vector<8x128xf32>
    %c0_8 = arith.constant 0 : index
    %c0_9 = arith.constant 0 : index
    %13 = vector.load %arg3[%c0_8, %c0_9] : memref<8x128xf32, #tpu.memory_space<vmem>>, vector<8x128xf32>
    tpu.vector_store %arg3[%c0_8, %c0_9], %12 {strides = array<i32>} : memref<8x128xf32, #tpu.memory_space<vmem>>, vector<8x128xf32>,
    return
  }
  func.func @transform_0(%arg0: i32) -> (i32, i32) {
    %c0_i32 = arith.constant 0 : i32
    %c0_i32_0 = arith.constant 0 : i32
    return %arg0, %c0_i32 : i32, i32
  }
  func.func @transform_1(%arg0: i32) -> (i32, i32) {
    %c0_i32 = arith.constant 0 : i32
    %c0_i32_0 = arith.constant 0 : i32
    return %arg0, %c0_i32 : i32, i32
  }
  func.func @transform_2(%arg0: i32) -> (i32, i32) {
    %c0_i32 = arith.constant 0 : i32
    %c0_i32_0 = arith.constant 0 : i32
    return %arg0, %c0_i32 : i32, i32
  }
  func.func @transform_3(%arg0: i32) -> (i32, i32) {
    %c0_i32 = arith.constant 0 : i32
    %c0_i32_0 = arith.constant 0 : i32
    return %arg0, %c0_i32 : i32, i32
  }
}

</mosaic_0001>

<bundles_post_ra>
// kernel: simple_kt_forward.1
= control target key start
LH: loop header
LB: loop body
LE: loop exit
PB: predicated region body
PF: predicated region fallthrough
CT: control target
= control target key end

     0   :  { %s69_s0 = inlined_call_operand.vmem [shape: f32[8,128], index: 0, kind: input, shape index: {}]   ;;  %s70_s1 = inlined_call_operand.vmem [shape: f32[8,128], index: 1, kind: input, shape index: {}]   ;;  %s71_s3 = inlined_call_operand.vmem [shape: f32[8,128], index: 3, kind: output, shape index: {1}]   ;;  %s72_s2 = inlined_call_operand.vmem [shape: f32[8,128], index: 2, kind: output, shape index: {0}]  }
   0x1   :  { %v13_v0 = vld [vmem:[%s69_s0] sm:$0xff] }
   0x2   :  { %v14_v1 = vld [vmem:[%s70_s1] sm:$0xff] }
   0x3   :  { %v15_v2 = vadd.f32 %v14_v1, %v13_v0 }
   0x5   :  { %v16_v3 = vsub.f32 0.0, %v15_v2 }
   0x7   :  { %v17_v4 = vmul.f32 1.442695, %v16_v3 }
   0x9   :  { %33 = vpow2.f32 %v17_v4 }
  0x13   :  { %v34_v5 = vpop.eup %33 }
  0x14   :  { %v19_v6 = vadd.f32 1.0, %v34_v5 }
  0x16   :  { %35 = vrcp.f32 %v19_v6 }
  0x20   :  { %v36_v7 = vpop.eup %35 }
  0x21   :  { %22 = vst [vmem:[%s71_s3] sm:$0xff] %v36_v7  ;;  %v23_v8 = vsub.f32 1.0, %v36_v7 }
  0x23   :  { %24 = vst [vmem:[%s72_s2] sm:$0xff] %v23_v8 }

</bundles_post_ra>
